<compile_context>
chip_gen: v5e
topology: v5e:2x2
jax: 0.10.0
libtpu: 0.0.40
codegen_flags: <defaults>
</compile_context>

<pallas_src>
import functools

import numpy as np
import jax
import jax.numpy as jnp
from jax.experimental import pallas as pl
from jax.experimental.pallas import tpu as pltpu

_GRAD_FACTOR = 10.0
_NORMAL_FACTOR = 1.0


def _pack4(a, b, c, d):
    """Pack four scalars into a (1, 1, 4) f32 block via a lane select."""
    lane = jax.lax.broadcasted_iota(jnp.int32, (1, 1, 4), 2)
    return jnp.where(lane == 0, a,
           jnp.where(lane == 1, b,
           jnp.where(lane == 2, c, d))).astype(jnp.float32)


def _depth_loss_kernel(*refs, criterion, C, H, W, need_grad, need_norm):
    """Grid step (n, c): one channel plane of one image.

    Accumulates (depth_num, depth_den, grad_sum, cos_sum) per image into the
    resident (1, 1, 4) output block; Sobel / cosine work runs once per image
    at the last channel step.
    """
    use_sum = need_grad and C > 1
    it = iter(refs)
    pred_ref = next(it)                              # (H, W) current channel
    target_ref = next(it)                            # (H, W)
    bands_h_ref = next(it) if need_grad else None    # (2, H, H) [smooth, diff]
    bands_w_ref = next(it) if need_grad else None    # (2, W, W) [smooth, diff]
    sel_ref = next(it) if need_norm else None        # (H, C) chunk selector
    out_ref = next(it)                               # (1, 1, 4) partial sums
    sum_p_ref = next(it) if use_sum else None        # (H, W) f32 scratch
    sum_t_ref = next(it) if use_sum else None        # (H, W) f32 scratch

    c = pl.program_id(1)

    p = pred_ref[...].astype(jnp.float32)
    t = target_ref[...].astype(jnp.float32)

    # ---- init per-image accumulators at the first channel ------------------
    @pl.when(c == 0)
    def _init():
        out_ref[...] = jnp.zeros_like(out_ref)
        if use_sum:
            sum_p_ref[...] = jnp.zeros_like(sum_p_ref)
            sum_t_ref[...] = jnp.zeros_like(sum_t_ref)

    # ---- per-channel depth-loss partials (numerator, denominator) ----------
    if criterion == 'l1':
        mask = (t > 0.0).astype(jnp.float32)
        diff = (t - p) * mask
        depth_num = jnp.sum(jnp.abs(diff))
        depth_den = jnp.sum(mask)
    elif criterion == 'l2':
        mask = (t > 0.0).astype(jnp.float32)
        diff = (t - p) * mask
        depth_num = jnp.sum(diff * diff)
        depth_den = jnp.sum(mask)
    else:  # RMSLE: log(pred+1) - log(target+1) == log((pred+1)/(target+1))
        d = jnp.log((p + 1.0) / (t + 1.0))
        depth_num = jnp.sum(d * d)
        depth_den = float(H * W)

    out_ref[...] = out_ref[...] + _pack4(depth_num, depth_den, 0.0, 0.0)

    if use_sum:
        # Running channel sum for the Sobel mean (mean fused in-kernel).
        sum_p_ref[...] = sum_p_ref[...] + p
        sum_t_ref[...] = sum_t_ref[...] + t

    # ---- Sobel gradients + grad / cosine partials at the last channel ------
    if need_grad:
        @pl.when(c == C - 1)
        def _finalize():
            smooth_h = bands_h_ref[0]    # (H, H) tridiag(1,2,1)
            diff_h = bands_h_ref[1]      # (H, H) (+1 sub, -1 super)
            smooth_w = bands_w_ref[0]    # (W, W) tridiag(1,2,1)
            diff_w = bands_w_ref[1]      # (W, W) (-1 sub, +1 super)

            def sobel(x):                # (H, W) -> (gy, gx), zero-padded conv
                gy = jnp.dot(
                    jnp.dot(diff_h, x, preferred_element_type=jnp.float32),
                    smooth_w, preferred_element_type=jnp.float32)
                gx = jnp.dot(
                    jnp.dot(smooth_h, x, preferred_element_type=jnp.float32),
                    diff_w, preferred_element_type=jnp.float32)
                return gy, gx

            inv_c = 1.0 / C
            if not need_norm:
                # Sobel is linear: grad(mean_p) - grad(mean_t) == grad(mean
                # diff) -> half the matmul / elementwise work (epochs 4..7).
                md = (p - t) if C == 1 else (sum_p_ref[...] - sum_t_ref[...]) * inv_c
                gy_d, gx_d = sobel(md)
                grad_sum = jnp.sum(jnp.abs(gy_d)) + jnp.sum(jnp.abs(gx_d))
                cos_sum = 0.0
            else:
                m_p = p if C == 1 else sum_p_ref[...] * inv_c
                m_t = t if C == 1 else sum_t_ref[...] * inv_c
                gy_p, gx_p = sobel(m_p)
                gy_t, gx_t = sobel(m_t)
                sel = sel_ref[...]       # (H, C): row -> torch .view chunk

                def chunk_sums(x):       # (H, W) -> (1, C) per-chunk sums
                    rows = jnp.sum(x, axis=-1, keepdims=True)           # (H, 1)
                    return jnp.sum(rows * sel, axis=0, keepdims=True)   # (1, C)

                def dir_stats(gp, gt):
                    g_abs = jnp.sum(jnp.abs(gp - gt))
                    prod = chunk_sums(gp * gt)
                    na = chunk_sums(gp * gp)
                    nb = chunk_sums(gt * gt)
                    # 1e-8 guard: differs from torch only for all-zero-gradient
                    # chunks (torch would yield NaN there).
                    cos = prod / (jnp.sqrt(na) * jnp.sqrt(nb) + 1e-8)
                    return g_abs, jnp.sum(cos)

                gy_abs, gy_cos = dir_stats(gy_p, gy_t)
                gx_abs, gx_cos = dir_stats(gx_p, gx_t)
                grad_sum = gy_abs + gx_abs
                cos_sum = gy_cos + gx_cos

            out_ref[...] = out_ref[...] + _pack4(0.0, 0.0, grad_sum, cos_sum)


def _band(n, sub, diag, sup):
    """n x n band matrix: `sub` on j==i-1, `diag` on j==i, `sup` on j==i+1."""
    i = np.arange(n)[:, None]
    j = np.arange(n)[None, :]
    m = sub * (j == i - 1) + diag * (j == i) + sup * (j == i + 1)
    return m.astype(np.float32)


@functools.partial(jax.jit, static_argnums=(0, 1, 2))
def _depth_loss_impl(criterion, need_grad, need_norm, pred, target):
    N, C, H, W = pred.shape
    if (H * W) % C != 0:
        raise ValueError("torch .view(N, C, -1) requires C | H*W")
    if need_norm and H % C != 0:
        # TODO(synk): general C | H*W chunking (chunks crossing rows) would
        # need an in-kernel flatten; only full-row chunks are supported here.
        raise ValueError("NormLoss chunking requires C | H")

    use_sum = need_grad and C > 1

    kernel = functools.partial(
        _depth_loss_kernel, criterion=criterion, C=C, H=H, W=W,
        need_grad=need_grad, need_norm=need_norm)

    plane_spec = pl.BlockSpec((None, None, H, W), lambda n, c: (n, c, 0, 0))
    in_arrays = [pred, target]
    in_specs = [plane_spec, plane_spec]

    if need_grad:
        # Separable Sobel as band matrices (built once; constant block index
        # => copied into VMEM a single time, never per grid step).
        bands_h = jnp.asarray(np.stack([_band(H, 1.0, 2.0, 1.0),
                                        _band(H, 1.0, 0.0, -1.0)]))
        bands_w = jnp.asarray(np.stack([_band(W, 1.0, 2.0, 1.0),
                                        _band(W, -1.0, 0.0, 1.0)]))
        in_arrays += [bands_h, bands_w]
        in_specs += [pl.BlockSpec((2, H, H), lambda n, c: (0, 0, 0)),
                     pl.BlockSpec((2, W, W), lambda n, c: (0, 0, 0))]
    if need_norm:
        r = H // C
        sel = (np.arange(H)[:, None] // r == np.arange(C)[None, :])
        in_arrays.append(jnp.asarray(sel.astype(np.float32)))
        in_specs.append(pl.BlockSpec((H, C), lambda n, c: (0, 0)))

    scratch_shapes = []
    if use_sum:
        scratch_shapes = [pltpu.VMEM((H, W), jnp.float32),
                          pltpu.VMEM((H, W), jnp.float32)]

    # Generation-aware VMEM budget: ~80% of physical (≈51 MiB on v7x,
    # ≈102 MiB on v5e/v6e), conservative fallback off-TPU / older jax.
    try:
        cap = int(pltpu.get_tpu_info().vmem_capacity_bytes)
    except Exception:
        cap = 64 * 1024 * 1024
    vmem_limit = int(min(max(32 * 1024 * 1024, (4 * cap) // 5),
                         128 * 1024 * 1024))

    # TODO(synk): for single images whose (H, W) plane + band matrices exceed
    # the per-step VMEM budget, add a third grid axis over row tiles with a
    # 1-row halo and emit per-tile partials.
    parts = pl.pallas_call(
        kernel,
        out_shape=jax.ShapeDtypeStruct((N, 1, 4), jnp.float32),
        grid_spec=pltpu.PrefetchScalarGridSpec(
            num_scalar_prefetch=0,
            grid=(N, C),
            in_specs=in_specs,
            out_specs=pl.BlockSpec((1, 1, 4), lambda n, c: (n, 0, 0)),
            scratch_shapes=scratch_shapes),
        compiler_params=pltpu.CompilerParams(
            # TODO(synk): verify "parallel" shards the batch axis across both
            # v7x TensorCores; switch to pltpu.CORE_PARALLEL if it does not.
            dimension_semantics=("parallel", "arbitrary"),
            vmem_limit_bytes=vmem_limit),
    )(*in_arrays)

    # Tiny final reduction in JAX: sum per-image partials, then divide.
    parts = parts.reshape(N, 4)
    depth_num = jnp.sum(parts[:, 0])
    depth_den = jnp.sum(parts[:, 1])   # 0/0 only if no valid pixel (same as torch)
    grad_abs = jnp.sum(parts[:, 2])
    cos_tot = jnp.sum(parts[:, 3])

    if criterion in ('l1', 'l2'):
        depth = depth_num / depth_den
    else:
        depth = jnp.sqrt(depth_num / depth_den)

    loss = depth
    if need_grad:
        loss = loss + (grad_abs / float(2 * N * H * W)) * _GRAD_FACTOR
    if need_norm:
        loss = loss + (1.0 - cos_tot / float(2 * N * C)) * _NORMAL_FACTOR
    return loss


def depth_loss(criterion, pred, target, epoch=0):
    """JAX/Pallas equivalent of DepthLoss.forward(criterion, pred, target, epoch)."""
    # Only three behavioural regimes exist; keying the jit on these booleans
    # (instead of the raw epoch) avoids a recompile every epoch.
    need_grad = bool(epoch > 3)
    need_norm = bool(epoch > 7)
    return _depth_loss_impl(criterion, need_grad, need_norm, pred, target)


# ----------------------- pure-JAX reference (for checking) ------------------
_FX_NP = np.array([[1., 0., -1.], [2., 0., -2.], [1., 0., -1.]], np.float32)
_FY_NP = np.array([[1., 2., 1.], [0., 0., 0.], [-1., -2., -1.]], np.float32)


def _ref_conv3x3(img, w):
    N, H, W = img.shape
    p = jnp.pad(img, ((0, 0), (1, 1), (1, 1)))
    out = jnp.zeros_like(img)
    for ki in range(3):
        for kj in range(3):
            out = out + float(w[ki, kj]) * p[:, ki:ki + H, kj:kj + W]
    return out


def _ref_imgrad_yx(img):
    N, C, H, W = img.shape
    m = jnp.mean(img, axis=1)
    gy = _ref_conv3x3(m, _FY_NP)
    gx = _ref_conv3x3(m, _FX_NP)
    return jnp.concatenate([gy.reshape(N, C, -1), gx.reshape(N, C, -1)], axis=1)


def ref_depth_loss(criterion, pred, target, epoch=0):
    pred = pred.astype(jnp.float32)
    target = target.astype(jnp.float32)
    if criterion == 'l1':
        mask = (target > 0).astype(jnp.float32)
        diff = (target - pred) * mask
        depth = jnp.sum(jnp.abs(diff)) / jnp.sum(mask)
    elif criterion == 'l2':
        mask = (target > 0).astype(jnp.float32)
        diff = (target - pred) * mask
        depth = jnp.sum(diff * diff) / jnp.sum(mask)
    else:
        d = jnp.log(pred + 1.0) - jnp.log(target + 1.0)
        depth = jnp.sqrt(jnp.mean(d * d))
    gp = _ref_imgrad_yx(pred)
    gt = _ref_imgrad_yx(target)
    grad_loss = jnp.mean(jnp.abs(gp - gt)) * 10.0 * float(epoch > 3)
    prod = jnp.sum(gp * gt, axis=-1)
    cos = prod / (jnp.sqrt(jnp.sum(gp * gp, axis=-1)) *
                  jnp.sqrt(jnp.sum(gt * gt, axis=-1)))
    norm_loss = (1.0 - jnp.mean(cos)) * 1.0 * float(epoch > 7)
    return depth + grad_loss + norm_loss


if __name__ == "__main__":
    key = jax.random.PRNGKey(0)
    k1, k2 = jax.random.split(key)
    # Small but lane-dense shapes (W multiple of 128 per the perf review);
    # depth-like positive values keep log() and the >0 mask well defined.
    N, C, H, W = 2, 4, 16, 128
    pred = jax.random.uniform(k1, (N, C, H, W), jnp.float32, 0.1, 2.0)
    target = jax.random.uniform(k2, (N, C, H, W), jnp.float32, 0.1, 2.0)

    cases = [('l1', 10), ('l2', 10), ('rmsle', 10),   # depth + grad + normal
             ('l1', 5),                                # depth + grad only
             ('l1', 2)]                                # depth only
    for criterion, epoch in cases:
        out = jax.block_until_ready(depth_loss(criterion, pred, target, epoch))
        ref = jax.block_until_ready(ref_depth_loss(criterion, pred, target, epoch))
        assert np.isfinite(float(out)), f"non-finite loss for {criterion}@{epoch}"
        err = abs(float(out) - float(ref))
        tol = 5e-3 * max(1.0, abs(float(ref)))
        assert err < tol, f"{criterion}@{epoch}: kernel={float(out)} ref={float(ref)}"

    # bf16 inputs accepted directly (cast to f32 inside the kernel).
    out = jax.block_until_ready(
        depth_loss('l1', pred.astype(jnp.bfloat16), target.astype(jnp.bfloat16), 10))
    ref = jax.block_until_ready(
        ref_depth_loss('l1', pred.astype(jnp.bfloat16), target.astype(jnp.bfloat16), 10))
    assert abs(float(out) - float(ref)) < 2e-2 * max(1.0, abs(float(ref))), \
        f"bf16: kernel={float(out)} ref={float(ref)}"

    print("KERNEL_OK")
</pallas_src>

<mosaic_0001>
module attributes {stable_mosaic.version = 11 : i64} {
  func.func @_depth_loss_kernel(%arg0: i32, %arg1: i32, %arg2: memref<1x1x16x128xf32, #tpu.memory_space<vmem>>, %arg3: memref<1x1x16x128xf32, #tpu.memory_space<vmem>>, %arg4: memref<2x16x16xf32, #tpu.memory_space<vmem>>, %arg5: memref<2x128x128xf32, #tpu.memory_space<vmem>>, %arg6: memref<16x4xf32, #tpu.memory_space<vmem>>, %arg7: memref<1x1x4xf32, #tpu.memory_space<vmem>>, %arg8: memref<16x128xf32, #tpu.memory_space<vmem>>, %arg9: memref<16x128xf32, #tpu.memory_space<vmem>>) attributes {dimension_semantics = [#tpu.dimension_semantics<parallel>, #tpu.dimension_semantics<arbitrary>], iteration_bounds = array<i64: 2, 4>, scalar_prefetch = 0 : i64, scratch_operands = 2 : i64, tpu.core_type = #tpu.core_type<tc>, window_params = [{transform_indices = @transform_0, window_bounds = array<i64: 1, 1, 16, 128>}, {transform_indices = @transform_1, window_bounds = array<i64: 1, 1, 16, 128>}, {pipeline_mode = #tpu.pipeline_mode<synchronous>, transform_indices = @transform_2, window_bounds = array<i64: 2, 16, 16>}, {pipeline_mode = #tpu.pipeline_mode<synchronous>, transform_indices = @transform_3, window_bounds = array<i64: 2, 128, 128>}, {pipeline_mode = #tpu.pipeline_mode<synchronous>, transform_indices = @transform_4, window_bounds = array<i64: 16, 4>}, {transform_indices = @transform_5, window_bounds = array<i64: 1, 1, 4>}]} {
    %c0 = arith.constant 0 : index
    %c0_0 = arith.constant 0 : index
    %c0_1 = arith.constant 0 : index
    %c0_2 = arith.constant 0 : index
    %0 = vector.load %arg2[%c0, %c0_0, %c0_1, %c0_2] : memref<1x1x16x128xf32, #tpu.memory_space<vmem>>, vector<1x1x16x128xf32>
    %1 = vector.shape_cast %0 : vector<1x1x16x128xf32> to vector<16x128xf32>
    %c0_3 = arith.constant 0 : index
    %c0_4 = arith.constant 0 : index
    %c0_5 = arith.constant 0 : index
    %c0_6 = arith.constant 0 : index
    %2 = vector.load %arg3[%c0_3, %c0_4, %c0_5, %c0_6] : memref<1x1x16x128xf32, #tpu.memory_space<vmem>>, vector<1x1x16x128xf32>
    %3 = vector.shape_cast %2 : vector<1x1x16x128xf32> to vector<16x128xf32>
    %c0_i32 = arith.constant 0 : i32
    %4 = arith.cmpi eq, %arg1, %c0_i32 : i32
    %5 = arith.extui %4 : i1 to i32
    %c0_i32_7 = arith.constant 0 : i32
    %6 = arith.cmpi ne, %5, %c0_i32_7 : i32
    scf.if %6 {
      %cst_28 = arith.constant 0.000000e+00 : f32
      %48 = vector.broadcast %cst_28 : f32 to vector<1x1x4xf32>
      %c0_29 = arith.constant 0 : index
      %c0_30 = arith.constant 0 : index
      %c0_31 = arith.constant 0 : index
      %49 = vector.load %arg7[%c0_29, %c0_30, %c0_31] : memref<1x1x4xf32, #tpu.memory_space<vmem>>, vector<1x1x4xf32>
      tpu.vector_store %arg7[%c0_29, %c0_30, %c0_31], %48 {strides = array<i32>} : memref<1x1x4xf32, #tpu.memory_space<vmem>>, vector<1x1x4xf32>,
      %cst_32 = arith.constant 0.000000e+00 : f32
      %50 = vector.broadcast %cst_32 : f32 to vector<16x128xf32>
      %c0_33 = arith.constant 0 : index
      %c0_34 = arith.constant 0 : index
      %51 = vector.load %arg8[%c0_33, %c0_34] : memref<16x128xf32, #tpu.memory_space<vmem>>, vector<16x128xf32>
      tpu.vector_store %arg8[%c0_33, %c0_34], %50 {strides = array<i32>} : memref<16x128xf32, #tpu.memory_space<vmem>>, vector<16x128xf32>,
      %cst_35 = arith.constant 0.000000e+00 : f32
      %52 = vector.broadcast %cst_35 : f32 to vector<16x128xf32>
      %c0_36 = arith.constant 0 : index
      %c0_37 = arith.constant 0 : index
      %53 = vector.load %arg9[%c0_36, %c0_37] : memref<16x128xf32, #tpu.memory_space<vmem>>, vector<16x128xf32>
      tpu.vector_store %arg9[%c0_36, %c0_37], %52 {strides = array<i32>} : memref<16x128xf32, #tpu.memory_space<vmem>>, vector<16x128xf32>,
    } else {
    }
    %cst = arith.constant 0.000000e+00 : f32
    %7 = vector.broadcast %cst : f32 to vector<16x128xf32>
    %8 = arith.cmpf ogt, %3, %7 : vector<16x128xf32>
    %9 = arith.extui %8 : vector<16x128xi1> to vector<16x128xi32>
    %10 = arith.sitofp %9 : vector<16x128xi32> to vector<16x128xf32>
    %11 = arith.subf %3, %1 : vector<16x128xf32>
    %12 = arith.mulf %11, %10 : vector<16x128xf32>
    %13 = math.absf %12 : vector<16x128xf32>
    %14 = vector.shape_cast %13 : vector<16x128xf32> to vector<1x16x128xf32>
    %cst_8 = arith.constant dense<0.000000e+00> : vector<1xf32>
    %15 = vector.multi_reduction <add>, %14, %cst_8 [1, 2] : vector<1x16x128xf32> to vector<1xf32>
    %16 = vector.shape_cast %15 : vector<1xf32> to vector<1x1x1xf32>
    %17 = vector.extract %16[0, 0, 0] : f32 from vector<1x1x1xf32>
    %18 = vector.shape_cast %10 : vector<16x128xf32> to vector<1x16x128xf32>
    %cst_9 = arith.constant dense<0.000000e+00> : vector<1xf32>
    %19 = vector.multi_reduction <add>, %18, %cst_9 [1, 2] : vector<1x16x128xf32> to vector<1xf32>
    %20 = vector.shape_cast %19 : vector<1xf32> to vector<1x1x1xf32>
    %21 = vector.extract %20[0, 0, 0] : f32 from vector<1x1x1xf32>
    %c0_10 = arith.constant 0 : index
    %c0_11 = arith.constant 0 : index
    %c0_12 = arith.constant 0 : index
    %22 = vector.load %arg7[%c0_10, %c0_11, %c0_12] : memref<1x1x4xf32, #tpu.memory_space<vmem>>, vector<1x1x4xf32>
    %23 = tpu.iota {dimensions = array<i32: 2>} : vector<1x1x4xi32>
    %c0_i32_13 = arith.constant 0 : i32
    %24 = vector.broadcast %c0_i32_13 : i32 to vector<1x1x4xi32>
    %25 = arith.cmpi eq, %23, %24 : vector<1x1x4xi32>
    %c1_i32 = arith.constant 1 : i32
    %26 = vector.broadcast %c1_i32 : i32 to vector<1x1x4xi32>
    %27 = arith.cmpi eq, %23, %26 : vector<1x1x4xi32>
    %c2_i32 = arith.constant 2 : i32
    %28 = vector.broadcast %c2_i32 : i32 to vector<1x1x4xi32>
    %29 = arith.cmpi eq, %23, %28 : vector<1x1x4xi32>
    %cst_14 = arith.constant 0.000000e+00 : f32
    %cst_15 = arith.constant 0.000000e+00 : f32
    %30 = vector.broadcast %cst_14 : f32 to vector<1x1x4xf32>
    %31 = vector.broadcast %cst_15 : f32 to vector<1x1x4xf32>
    %32 = arith.select %29, %30, %31 : vector<1x1x4xi1>, vector<1x1x4xf32>
    %33 = vector.broadcast %21 : f32 to vector<1x1x4xf32>
    %34 = arith.select %27, %33, %32 : vector<1x1x4xi1>, vector<1x1x4xf32>
    %35 = vector.broadcast %17 : f32 to vector<1x1x4xf32>
    %36 = arith.select %25, %35, %34 : vector<1x1x4xi1>, vector<1x1x4xf32>
    %37 = arith.addf %22, %36 : vector<1x1x4xf32>
    %c0_16 = arith.constant 0 : index
    %c0_17 = arith.constant 0 : index
    %c0_18 = arith.constant 0 : index
    %38 = vector.load %arg7[%c0_16, %c0_17, %c0_18] : memref<1x1x4xf32, #tpu.memory_space<vmem>>, vector<1x1x4xf32>
    tpu.vector_store %arg7[%c0_16, %c0_17, %c0_18], %37 {strides = array<i32>} : memref<1x1x4xf32, #tpu.memory_space<vmem>>, vector<1x1x4xf32>,
    %c0_19 = arith.constant 0 : index
    %c0_20 = arith.constant 0 : index
    %39 = vector.load %arg8[%c0_19, %c0_20] : memref<16x128xf32, #tpu.memory_space<vmem>>, vector<16x128xf32>
    %40 = arith.addf %39, %1 : vector<16x128xf32>
    %c0_21 = arith.constant 0 : index
    %c0_22 = arith.constant 0 : index
    %41 = vector.load %arg8[%c0_21, %c0_22] : memref<16x128xf32, #tpu.memory_space<vmem>>, vector<16x128xf32>
    tpu.vector_store %arg8[%c0_21, %c0_22], %40 {strides = array<i32>} : memref<16x128xf32, #tpu.memory_space<vmem>>, vector<16x128xf32>,
    %c0_23 = arith.constant 0 : index
    %c0_24 = arith.constant 0 : index
    %42 = vector.load %arg9[%c0_23, %c0_24] : memref<16x128xf32, #tpu.memory_space<vmem>>, vector<16x128xf32>
    %43 = arith.addf %42, %3 : vector<16x128xf32>
    %c0_25 = arith.constant 0 : index
    %c0_26 = arith.constant 0 : index
    %44 = vector.load %arg9[%c0_25, %c0_26] : memref<16x128xf32, #tpu.memory_space<vmem>>, vector<16x128xf32>
    tpu.vector_store %arg9[%c0_25, %c0_26], %43 {strides = array<i32>} : memref<16x128xf32, #tpu.memory_space<vmem>>, vector<16x128xf32>,
    %c3_i32 = arith.constant 3 : i32
    %45 = arith.cmpi eq, %arg1, %c3_i32 : i32
    %46 = arith.extui %45 : i1 to i32
    %c0_i32_27 = arith.constant 0 : i32
    %47 = arith.cmpi ne, %46, %c0_i32_27 : i32
    scf.if %47 {
      %c0_28 = arith.constant 0 : index
      %c0_29 = arith.constant 0 : index
      %c0_30 = arith.constant 0 : index
      %48 = vector.load %arg4[%c0_28, %c0_29, %c0_30] : memref<2x16x16xf32, #tpu.memory_space<vmem>>, vector<1x16x16xf32>
      %49 = vector.shape_cast %48 : vector<1x16x16xf32> to vector<16x16xf32>
      %c1 = arith.constant 1 : index
      %c0_31 = arith.constant 0 : index
      %c0_32 = arith.constant 0 : index
      %50 = vector.load %arg4[%c1, %c0_31, %c0_32] : memref<2x16x16xf32, #tpu.memory_space<vmem>>, vector<1x16x16xf32>
      %51 = vector.shape_cast %50 : vector<1x16x16xf32> to vector<16x16xf32>
      %c0_33 = arith.constant 0 : index
      %c0_34 = arith.constant 0 : index
      %c0_35 = arith.constant 0 : index
      %52 = vector.load %arg5[%c0_33, %c0_34, %c0_35] : memref<2x128x128xf32, #tpu.memory_space<vmem>>, vector<1x128x128xf32>
      %53 = vector.shape_cast %52 : vector<1x128x128xf32> to vector<128x128xf32>
      %c1_36 = arith.constant 1 : index
      %c0_37 = arith.constant 0 : index
      %c0_38 = arith.constant 0 : index
      %54 = vector.load %arg5[%c1_36, %c0_37, %c0_38] : memref<2x128x128xf32, #tpu.memory_space<vmem>>, vector<1x128x128xf32>
      %55 = vector.shape_cast %54 : vector<1x128x128xf32> to vector<128x128xf32>
      %c0_39 = arith.constant 0 : index
      %c0_40 = arith.constant 0 : index
      %56 = vector.load %arg8[%c0_39, %c0_40] : memref<16x128xf32, #tpu.memory_space<vmem>>, vector<16x128xf32>
      %cst_41 = arith.constant 2.500000e-01 : f32
      %57 = vector.broadcast %cst_41 : f32 to vector<16x128xf32>
      %58 = arith.mulf %56, %57 : vector<16x128xf32>
      %c0_42 = arith.constant 0 : index
      %c0_43 = arith.constant 0 : index
      %59 = vector.load %arg9[%c0_42, %c0_43] : memref<16x128xf32, #tpu.memory_space<vmem>>, vector<16x128xf32>
      %cst_44 = arith.constant 2.500000e-01 : f32
      %60 = vector.broadcast %cst_44 : f32 to vector<16x128xf32>
      %61 = arith.mulf %59, %60 : vector<16x128xf32>
      %cst_45 = arith.constant dense<0.000000e+00> : vector<16x128xf32>
      %62 = tpu.matmul %51, %58, %cst_45 {dimension_numbers = #tpu.dot_dimension_numbers<[1], [0], [0], [1], [0, 0, 1, 1], [], []>} : vector<16x16xf32>, vector<16x128xf32>, vector<16x128xf32> -> vector<16x128xf32>
      %cst_46 = arith.constant dense<0.000000e+00> : vector<16x128xf32>
      %63 = tpu.matmul %62, %53, %cst_46 {dimension_numbers = #tpu.dot_dimension_numbers<[1], [0], [0], [1], [0, 0, 1, 1], [], []>} : vector<16x128xf32>, vector<128x128xf32>, vector<16x128xf32> -> vector<16x128xf32>
      %cst_47 = arith.constant dense<0.000000e+00> : vector<16x128xf32>
      %64 = tpu.matmul %49, %58, %cst_47 {dimension_numbers = #tpu.dot_dimension_numbers<[1], [0], [0], [1], [0, 0, 1, 1], [], []>} : vector<16x16xf32>, vector<16x128xf32>, vector<16x128xf32> -> vector<16x128xf32>
      %cst_48 = arith.constant dense<0.000000e+00> : vector<16x128xf32>
      %65 = tpu.matmul %64, %55, %cst_48 {dimension_numbers = #tpu.dot_dimension_numbers<[1], [0], [0], [1], [0, 0, 1, 1], [], []>} : vector<16x128xf32>, vector<128x128xf32>, vector<16x128xf32> -> vector<16x128xf32>
      %cst_49 = arith.constant dense<0.000000e+00> : vector<16x128xf32>
      %66 = tpu.matmul %51, %61, %cst_49 {dimension_numbers = #tpu.dot_dimension_numbers<[1], [0], [0], [1], [0, 0, 1, 1], [], []>} : vector<16x16xf32>, vector<16x128xf32>, vector<16x128xf32> -> vector<16x128xf32>
      %cst_50 = arith.constant dense<0.000000e+00> : vector<16x128xf32>
      %67 = tpu.matmul %66, %53, %cst_50 {dimension_numbers = #tpu.dot_dimension_numbers<[1], [0], [0], [1], [0, 0, 1, 1], [], []>} : vector<16x128xf32>, vector<128x128xf32>, vector<16x128xf32> -> vector<16x128xf32>
      %cst_51 = arith.constant dense<0.000000e+00> : vector<16x128xf32>
      %68 = tpu.matmul %49, %61, %cst_51 {dimension_numbers = #tpu.dot_dimension_numbers<[1], [0], [0], [1], [0, 0, 1, 1], [], []>} : vector<16x16xf32>, vector<16x128xf32>, vector<16x128xf32> -> vector<16x128xf32>
      %cst_52 = arith.constant dense<0.000000e+00> : vector<16x128xf32>
      %69 = tpu.matmul %68, %55, %cst_52 {dimension_numbers = #tpu.dot_dimension_numbers<[1], [0], [0], [1], [0, 0, 1, 1], [], []>} : vector<16x128xf32>, vector<128x128xf32>, vector<16x128xf32> -> vector<16x128xf32>
      %c0_53 = arith.constant 0 : index
      %c0_54 = arith.constant 0 : index
      %70 = vector.load %arg6[%c0_53, %c0_54] : memref<16x4xf32, #tpu.memory_space<vmem>>, vector<16x4xf32>
      %71 = arith.subf %63, %67 : vector<16x128xf32>
      %72 = math.absf %71 : vector<16x128xf32>
      %73 = vector.shape_cast %72 : vector<16x128xf32> to vector<1x16x128xf32>
      %cst_55 = arith.constant dense<0.000000e+00> : vector<1xf32>
      %74 = vector.multi_reduction <add>, %73, %cst_55 [1, 2] : vector<1x16x128xf32> to vector<1xf32>
      %75 = vector.shape_cast %74 : vector<1xf32> to vector<1x1x1xf32>
      %76 = vector.extract %75[0, 0, 0] : f32 from vector<1x1x1xf32>
      %77 = arith.mulf %63, %67 : vector<16x128xf32>
      %cst_56 = arith.constant dense<0.000000e+00> : vector<16xf32>
      %78 = vector.multi_reduction <add>, %77, %cst_56 [1] : vector<16x128xf32> to vector<16xf32>
      %79 = vector.shape_cast %78 : vector<16xf32> to vector<16x1xf32>
      %80 = vector.broadcast %79 : vector<16x1xf32> to vector<16x4xf32>
      %81 = arith.mulf %80, %70 : vector<16x4xf32>
      %cst_57 = arith.constant dense<0.000000e+00> : vector<4xf32>
      %82 = vector.multi_reduction <add>, %81, %cst_57 [0] : vector<16x4xf32> to vector<4xf32>
      %83 = vector.shape_cast %82 : vector<4xf32> to vector<1x4xf32>
      %84 = arith.mulf %63, %63 : vector<16x128xf32>
      %cst_58 = arith.constant dense<0.000000e+00> : vector<16xf32>
      %85 = vector.multi_reduction <add>, %84, %cst_58 [1] : vector<16x128xf32> to vector<16xf32>
      %86 = vector.shape_cast %85 : vector<16xf32> to vector<16x1xf32>
      %87 = vector.broadcast %86 : vector<16x1xf32> to vector<16x4xf32>
      %88 = arith.mulf %87, %70 : vector<16x4xf32>
      %cst_59 = arith.constant dense<0.000000e+00> : vector<4xf32>
      %89 = vector.multi_reduction <add>, %88, %cst_59 [0] : vector<16x4xf32> to vector<4xf32>
      %90 = vector.shape_cast %89 : vector<4xf32> to vector<1x4xf32>
      %91 = arith.mulf %67, %67 : vector<16x128xf32>
      %cst_60 = arith.constant dense<0.000000e+00> : vector<16xf32>
      %92 = vector.multi_reduction <add>, %91, %cst_60 [1] : vector<16x128xf32> to vector<16xf32>
      %93 = vector.shape_cast %92 : vector<16xf32> to vector<16x1xf32>
      %94 = vector.broadcast %93 : vector<16x1xf32> to vector<16x4xf32>
      %95 = arith.mulf %94, %70 : vector<16x4xf32>
      %cst_61 = arith.constant dense<0.000000e+00> : vector<4xf32>
      %96 = vector.multi_reduction <add>, %95, %cst_61 [0] : vector<16x4xf32> to vector<4xf32>
      %97 = vector.shape_cast %96 : vector<4xf32> to vector<1x4xf32>
      %98 = math.sqrt %90 : vector<1x4xf32>
      %99 = math.sqrt %97 : vector<1x4xf32>
      %100 = arith.mulf %98, %99 : vector<1x4xf32>
      %cst_62 = arith.constant 9.99999993E-9 : f32
      %101 = vector.broadcast %cst_62 : f32 to vector<1x4xf32>
      %102 = arith.addf %100, %101 : vector<1x4xf32>
      %103 = arith.divf %83, %102 : vector<1x4xf32>
      %104 = vector.shape_cast %103 : vector<1x4xf32> to vector<1x1x4xf32>
      %cst_63 = arith.constant dense<0.000000e+00> : vector<1xf32>
      %105 = vector.multi_reduction <add>, %104, %cst_63 [1, 2] : vector<1x1x4xf32> to vector<1xf32>
      %106 = vector.shape_cast %105 : vector<1xf32> to vector<1x1x1xf32>
      %107 = vector.extract %106[0, 0, 0] : f32 from vector<1x1x1xf32>
      %108 = arith.subf %65, %69 : vector<16x128xf32>
      %109 = math.absf %108 : vector<16x128xf32>
      %110 = vector.shape_cast %109 : vector<16x128xf32> to vector<1x16x128xf32>
      %cst_64 = arith.constant dense<0.000000e+00> : vector<1xf32>
      %111 = vector.multi_reduction <add>, %110, %cst_64 [1, 2] : vector<1x16x128xf32> to vector<1xf32>
      %112 = vector.shape_cast %111 : vector<1xf32> to vector<1x1x1xf32>
      %113 = vector.extract %112[0, 0, 0] : f32 from vector<1x1x1xf32>
      %114 = arith.mulf %65, %69 : vector<16x128xf32>
      %cst_65 = arith.constant dense<0.000000e+00> : vector<16xf32>
      %115 = vector.multi_reduction <add>, %114, %cst_65 [1] : vector<16x128xf32> to vector<16xf32>
      %116 = vector.shape_cast %115 : vector<16xf32> to vector<16x1xf32>
      %117 = vector.broadcast %116 : vector<16x1xf32> to vector<16x4xf32>
      %118 = arith.mulf %117, %70 : vector<16x4xf32>
      %cst_66 = arith.constant dense<0.000000e+00> : vector<4xf32>
      %119 = vector.multi_reduction <add>, %118, %cst_66 [0] : vector<16x4xf32> to vector<4xf32>
      %120 = vector.shape_cast %119 : vector<4xf32> to vector<1x4xf32>
      %121 = arith.mulf %65, %65 : vector<16x128xf32>
      %cst_67 = arith.constant dense<0.000000e+00> : vector<16xf32>
      %122 = vector.multi_reduction <add>, %121, %cst_67 [1] : vector<16x128xf32> to vector<16xf32>
      %123 = vector.shape_cast %122 : vector<16xf32> to vector<16x1xf32>
      %124 = vector.broadcast %123 : vector<16x1xf32> to vector<16x4xf32>
      %125 = arith.mulf %124, %70 : vector<16x4xf32>
      %cst_68 = arith.constant dense<0.000000e+00> : vector<4xf32>
      %126 = vector.multi_reduction <add>, %125, %cst_68 [0] : vector<16x4xf32> to vector<4xf32>
      %127 = vector.shape_cast %126 : vector<4xf32> to vector<1x4xf32>
      %128 = arith.mulf %69, %69 : vector<16x128xf32>
      %cst_69 = arith.constant dense<0.000000e+00> : vector<16xf32>
      %129 = vector.multi_reduction <add>, %128, %cst_69 [1] : vector<16x128xf32> to vector<16xf32>
      %130 = vector.shape_cast %129 : vector<16xf32> to vector<16x1xf32>
      %131 = vector.broadcast %130 : vector<16x1xf32> to vector<16x4xf32>
      %132 = arith.mulf %131, %70 : vector<16x4xf32>
      %cst_70 = arith.constant dense<0.000000e+00> : vector<4xf32>
      %133 = vector.multi_reduction <add>, %132, %cst_70 [0] : vector<16x4xf32> to vector<4xf32>
      %134 = vector.shape_cast %133 : vector<4xf32> to vector<1x4xf32>
      %135 = math.sqrt %127 : vector<1x4xf32>
      %136 = math.sqrt %134 : vector<1x4xf32>
      %137 = arith.mulf %135, %136 : vector<1x4xf32>
      %cst_71 = arith.constant 9.99999993E-9 : f32
      %138 = vector.broadcast %cst_71 : f32 to vector<1x4xf32>
      %139 = arith.addf %137, %138 : vector<1x4xf32>
      %140 = arith.divf %120, %139 : vector<1x4xf32>
      %141 = vector.shape_cast %140 : vector<1x4xf32> to vector<1x1x4xf32>
      %cst_72 = arith.constant dense<0.000000e+00> : vector<1xf32>
      %142 = vector.multi_reduction <add>, %141, %cst_72 [1, 2] : vector<1x1x4xf32> to vector<1xf32>
      %143 = vector.shape_cast %142 : vector<1xf32> to vector<1x1x1xf32>
      %144 = vector.extract %143[0, 0, 0] : f32 from vector<1x1x1xf32>
      %145 = arith.addf %76, %113 : f32
      %146 = arith.addf %107, %144 : f32
      %c0_73 = arith.constant 0 : index
      %c0_74 = arith.constant 0 : index
      %c0_75 = arith.constant 0 : index
      %147 = vector.load %arg7[%c0_73, %c0_74, %c0_75] : memref<1x1x4xf32, #tpu.memory_space<vmem>>, vector<1x1x4xf32>
      %148 = tpu.iota {dimensions = array<i32: 2>} : vector<1x1x4xi32>
      %c0_i32_76 = arith.constant 0 : i32
      %149 = vector.broadcast %c0_i32_76 : i32 to vector<1x1x4xi32>
      %150 = arith.cmpi eq, %148, %149 : vector<1x1x4xi32>
      %c1_i32_77 = arith.constant 1 : i32
      %151 = vector.broadcast %c1_i32_77 : i32 to vector<1x1x4xi32>
      %152 = arith.cmpi eq, %148, %151 : vector<1x1x4xi32>
      %c2_i32_78 = arith.constant 2 : i32
      %153 = vector.broadcast %c2_i32_78 : i32 to vector<1x1x4xi32>
      %154 = arith.cmpi eq, %148, %153 : vector<1x1x4xi32>
      %155 = vector.broadcast %145 : f32 to vector<1x1x4xf32>
      %156 = vector.broadcast %146 : f32 to vector<1x1x4xf32>
      %157 = arith.select %154, %155, %156 : vector<1x1x4xi1>, vector<1x1x4xf32>
      %cst_79 = arith.constant 0.000000e+00 : f32
      %158 = vector.broadcast %cst_79 : f32 to vector<1x1x4xf32>
      %159 = arith.select %152, %158, %157 : vector<1x1x4xi1>, vector<1x1x4xf32>
      %cst_80 = arith.constant 0.000000e+00 : f32
      %160 = vector.broadcast %cst_80 : f32 to vector<1x1x4xf32>
      %161 = arith.select %150, %160, %159 : vector<1x1x4xi1>, vector<1x1x4xf32>
      %162 = arith.addf %147, %161 : vector<1x1x4xf32>
      %c0_81 = arith.constant 0 : index
      %c0_82 = arith.constant 0 : index
      %c0_83 = arith.constant 0 : index
      %163 = vector.load %arg7[%c0_81, %c0_82, %c0_83] : memref<1x1x4xf32, #tpu.memory_space<vmem>>, vector<1x1x4xf32>
      tpu.vector_store %arg7[%c0_81, %c0_82, %c0_83], %162 {strides = array<i32>} : memref<1x1x4xf32, #tpu.memory_space<vmem>>, vector<1x1x4xf32>,
    } else {
    }
    return
  }
  func.func @transform_0(%arg0: i32, %arg1: i32) -> (i32, i32, i32, i32) {
    %c0_i32 = arith.constant 0 : i32
    %c0_i32_0 = arith.constant 0 : i32
    %c0_i32_1 = arith.constant 0 : i32
    return %arg0, %arg1, %c0_i32, %c0_i32_0 : i32, i32, i32, i32
  }
  func.func @transform_1(%arg0: i32, %arg1: i32) -> (i32, i32, i32, i32) {
    %c0_i32 = arith.constant 0 : i32
    %c0_i32_0 = arith.constant 0 : i32
    %c0_i32_1 = arith.constant 0 : i32
    return %arg0, %arg1, %c0_i32, %c0_i32_0 : i32, i32, i32, i32
  }
  func.func @transform_2(%arg0: i32, %arg1: i32) -> (i32, i32, i32) {
    %c0_i32 = arith.constant 0 : i32
    %c0_i32_0 = arith.constant 0 : i32
    %c0_i32_1 = arith.constant 0 : i32
    %c0_i32_2 = arith.constant 0 : i32
    return %c0_i32, %c0_i32_0, %c0_i32_1 : i32, i32, i32
  }
  func.func @transform_3(%arg0: i32, %arg1: i32) -> (i32, i32, i32) {
    %c0_i32 = arith.constant 0 : i32
    %c0_i32_0 = arith.constant 0 : i32
    %c0_i32_1 = arith.constant 0 : i32
    %c0_i32_2 = arith.constant 0 : i32
    return %c0_i32, %c0_i32_0, %c0_i32_1 : i32, i32, i32
  }
  func.func @transform_4(%arg0: i32, %arg1: i32) -> (i32, i32) {
    %c0_i32 = arith.constant 0 : i32
    %c0_i32_0 = arith.constant 0 : i32
    %c0_i32_1 = arith.constant 0 : i32
    return %c0_i32, %c0_i32_0 : i32, i32
  }
  func.func @transform_5(%arg0: i32, %arg1: i32) -> (i32, i32, i32) {
    %c0_i32 = arith.constant 0 : i32
    %c0_i32_0 = arith.constant 0 : i32
    %c0_i32_1 = arith.constant 0 : i32
    return %arg0, %c0_i32, %c0_i32_0 : i32, i32, i32
  }
}

</mosaic_0001>

<bundles_post_ra>
// kernel: _depth_loss_impl.1
= control target key start
LH: loop header
LB: loop body
LE: loop exit
PB: predicated region body
PF: predicated region fallthrough
CT: control target
= control target key end

     0   :  { %s1813_s0 = inlined_call_operand.hbm [shape: f32[2,4,16,128], index: 0, kind: input, shape index: {}]   ;;  %s1814_s1 = inlined_call_operand.hbm [shape: f32[2,4,16,128], index: 1, kind: input, shape index: {}]   ;;  %s1815_s2 = inlined_call_operand.hbm [shape: f32[2,16,16], index: 2, kind: input, shape index: {}]   ;;  %s1816_s3 = inlined_call_operand.hbm [shape: f32[2,128,128], index: 3, kind: input, shape index: {}]   ;;  %s1817_s4 = inlined_call_operand.hbm [shape: f32[16,4], index: 4, kind: input, shape index: {}]   ;;  %s1818_s5 = inlined_call_operand.vmem [shape: f32[2,1,4], index: 5, kind: output, shape index: {}]  }
   0x1   :  { %1827 = sst [smem:[#allocation19_spill]] %s1815_s2 }
   0x2   :  { %1828 = sst [smem:[#allocation20_spill]] %s1816_s3 }
   0x3   :  { %1829 = sst [smem:[#allocation21_spill]] %s1817_s4 }
   0x4   :  { %10 = vsyncpa [#allocation5], 0 }
   0x5   :  { %12 = vsyncpa [#allocation5 + $0x1], 0 }
   0x6   :  { %13 = vsyncpa [#allocation7], 0 }
   0x7   :  { %15 = vsyncpa [#allocation7 + $0x1], 0 }
   0x8   :  { %16 = vsyncpa [#allocation10], 0  ;;  %s1497_s18 = smov 0   ;;  %s1499_s19 = smov 0  }
   0x9   :  { %s1501_s20 = smov 0   ;;  %s1503_s21 = smov 0  }
   0xa   :  { %s1505_s22 = smov 0   ;;  %s1507_s23 = smov 0  }
   0xb   :  { %s1509_s24 = smov 0   ;;  %s1511_s25 = smov 0  }
   0xc LB: > { %1830 = sst [smem:[#allocation16_spill]] %s1454_s24  ;;  %s1819_s26 = sadd.s32 4294967295, %s1458_s25   ;;  %s1458_s25 = sphi %s1511_s25, %s22_s25   ;;  %s1454_s24 = sphi %s1509_s24, %s1846_s24   ;;  %s1450_s23 = sphi %s1507_s23, %s1851_s23   ;;  %s1446_s22 = sphi %s1505_s22, %s1844_s22   ;;  %s1442_s21 = sphi %s1503_s21, %s1850_s21   ;;  %s1438_s20 = sphi %s1501_s20, %s1849_s20   ;;  %s1434_s19 = sphi %s1499_s19, %s1848_s19   ;;  %s1430_s18 = sphi %s1497_s18, %s1847_s18  }
   0xd   : > { %p56_p0 = scmp.ne.s32.totalorder %s1434_s19, %s1430_s18  ;;  %p1539_p1 = scmp.eq.s32.totalorder %s1819_s26, 0 }
   0xe   : > { %p1046_p2 = scmp.ge.s32.totalorder %s1458_s25, 1  ;;  %p184_p3 = scmp.lt.s32.totalorder %s1458_s25, 9 }
   0xf   : > { %p1547_p4 = por %p1539_p1, %p56_p0  ;;  %s1833_s2 = sld [smem:[#allocation19_spill]] }
  0x10   : > { %p1554_p5 = pnand %p1046_p2, %p184_p3  ;;  %s1460_s8 = smov [#allocation8]  }
  0x11   : > { %s197_s9 = sshll.u32 %s1460_s8, 4  ;;  %s1836_s3 = sld [smem:[#allocation20_spill]]  ;;  %s198_s9 = int_to_ptr.vmem [resolvable:$true] %s197_s9 }
  0x12   : > { %p1123_p6 = pneg %p1554_p5  ;;  %s1820_s14 = smov 128  }
  0x13   : > { %s1822_s15 = smov 8   ;;  %s1463_s16 = smov [#allocation9]  }
  0x14   : > { %p1562_p7 = pnand %p1123_p6, %p1539_p1  ;;  %s211_s17 = sshll.u32 %s1463_s16, 4  ;;  %s212_s17 = int_to_ptr.vmem [resolvable:$true] %s211_s17 }
  0x15   : > { %s195_s6 = sshll.u32 %s1833_s2, 4  ;;  %s1837_s4 = sld [smem:[#allocation21_spill]]  ;;  %s196_s6 = int_to_ptr.hbm [resolvable:$true] %s195_s6 }
  0x16   : > { %1126 = dma.hbm_to_vmem [thread:$0]  (!%p1562_p7), %s196_s6, 512, %s198_s9, [#allocation7], %s1820_s14, %s1820_s14, %s1822_s15  }
  0x17   : > { %s209_s13 = sshll.u32 %s1836_s3, 4  ;;  %s1464_s8 = smov [#allocation11]   ;;  %s210_s13 = int_to_ptr.hbm [resolvable:$true] %s209_s13 }
  0x18   : > { %1129 = dma.hbm_to_vmem [thread:$0]  (!%p1562_p7), %s210_s13, 4096, %s212_s17, [#allocation10], %s1820_s14, %s1820_s14, %s1822_s15  }
  0x19   : > { %s225_s6 = sshll.u32 %s1464_s8, 4  ;;  %s31_s9 = sadd.s32 1, %s1450_s23  ;;  %s226_s6 = int_to_ptr.vmem [resolvable:$true] %s225_s6 }
  0x1a   : > { %p32_p8 = scmp.ge.s32.totalorder %s31_s9, 4  ;;  %s34_s11 = sadd.s32 1, %s1454_s24 }
  0x1b   : > { %s223_s30 = sshll.u32 %s1837_s4, 4  ;;  %s43_s12 = sadd.s32 1, %s1438_s20  ;;  %s224_s30 = int_to_ptr.hbm [resolvable:$true] %s223_s30 }
  0x1c   : > { %1132 = dma.hbm_to_vmem [thread:$0]  (!%p1562_p7), %s224_s30, 256, %s226_s6, [#allocation10], %s1820_s14, %s1820_s14, %s1822_s15  }
  0x1d   : > { %p50_p9 = scmp.ne.s32.totalorder %s1438_s20, %s1434_s19  ;;  %s1853_s9 = smov (%p32_p8, %s31_s9), 0 }
  0x1e   : > { %1838 = sst [smem:[#allocation17_spill]] %s1853_s9  ;;  %s1855_s11 = smov (!%p32_p8, %s34_s11), %s1454_s24 }
  0x1f   : > { %s39_s13 = ssub.s32 %s1450_s23, %s1853_s9  ;;  %p51_p10 = scmp.eq.s32.totalorder %s1458_s25, 0 }
  0x20   : > { %p36_p11 = scmp.ge.s32.totalorder %s1855_s11, 2  ;;  %p1143_p12 = scmp.lt.s32.totalorder %s1458_s25, 8 }
  0x21   : > { %p1599_p13 = por %p51_p10, %p50_p9  ;;  %s239_s16 = sand.u32 1, %s1438_s20  }
  0x22   : > { %s1857_s11 = smov (%p36_p11, %s1855_s11), 0  ;;  %s1051_s17 = sshll.u32 %s239_s16, 4 }
  0x23   : > { %1840 = sst [smem:[#allocation18_spill]] %s1857_s11  ;;  %s38_s18 = ssub.s32 %s1454_s24, %s1857_s11 }
  0x24   : > { %s40_s29 = sor.u32 %s39_s13, %s38_s18  ;;  %s1052_s30 = sshll.u32 %s1450_s23, 1 }
  0x25   : > { %p41_p0 = scmp.eq.s32.totalorder %s40_s29, 0  ;;  %s1053_s8 = sshll.u32 %s1454_s24, 3 }
  0x26   : > { %s248_s6 = sadd.s32 %s1053_s8, %s1052_s30  ;;  %s243_s26 = scalar_lea.vmem [#allocation4], %s1051_s17 }
  0x27   : > { %s253_s14 = sshll.u32 %s243_s26, 4  ;;  %s1054_s2 = sshll.u32 %s248_s6, 3  ;;  %s254_s14 = int_to_ptr.vmem [resolvable:$true] %s253_s14 }
  0x28   : > { %s1611_s15 = scalar_select %p41_p0, %s1438_s20, %s43_s12  }
  0x29   : > { %s250_s9 = scalar_lea.hbm %s1813_s0, %s1054_s2  ;;  %p1134_p2 = pnand %p1143_p12, %p1599_p13 }
  0x2a   : > { %s251_s11 = sshll.u32 %s250_s9, 4  ;;  %s240_s13 = scalar_lea.sflag [#allocation5], %s239_s16  ;;  %s252_s11 = int_to_ptr.hbm [resolvable:$true] %s251_s11 }
  0x2b   : > { %s1841_s18 = smov 8   ;;  %s1842_s29 = smov 128  }
  0x2c   : > { %1136 = dma.hbm_to_vmem [thread:$0]  (!%p1134_p2), %s252_s11, 256, %s254_s14, %s240_s13, %s1842_s29, %s1842_s29, %s1841_s18  }
  0x2d   : > { %s274_s12 = scalar_lea.hbm %s1814_s1, %s1054_s2  ;;  %s267_s8 = scalar_lea.vmem [#allocation6], %s1051_s17 }
  0x2e   : > { %s277_s6 = sshll.u32 %s267_s8, 4  ;;  %s275_s24 = sshll.u32 %s274_s12, 4  ;;  %s278_s6 = int_to_ptr.vmem [resolvable:$true] %s277_s6  ;;  %s276_s24 = int_to_ptr.hbm [resolvable:$true] %s275_s24 }
  0x2f   : > { %s263_s3 = sand.u32 1, %s1458_s25   ;;  %289 = sbr.rel (%p1554_p5) target bundleno = 946 (0x3b2), region = 40 }
  0x30   : > { %s264_s4 = scalar_lea.sflag [#allocation7], %s263_s3  ;;  %s291_s14 = sand.u32 (!%p1554_p5), 1, %s1434_s19  }
  0x31   : > { %1139 = dma.hbm_to_vmem [thread:$0]  (!%p1134_p2), %s276_s24, 256, %s278_s6, %s264_s4, %s1842_s29, %s1842_s29, %s1841_s18  }
  0x32   : > { %s1060_s9 = sshll.u32 (!%p1554_p5), %s291_s14, 4  ;;  %s292_s11 = scalar_lea.sflag (!%p1554_p5), [#allocation5], %s291_s14 }
  0x33   : > { %s295_s2 = scalar_lea.vmem (!%p1554_p5), [#allocation4], %s1060_s9 }
  0x34   : > { %1413 = dma.done.wait (%p1547_p4), %s292_s11, 256  }
  0x35   : > { %1415 = vsyncadd (%p1547_p4), %s292_s11, 4294967040  ;;  %s1843_s10 = sadd.s32 4294967295, %s1458_s25   ;;  %s305_s24 = scalar_lea.vmem [#allocation6], %s1060_s9 }
  0x36   : > { %s301_s16 = sand.u32 1, %s1843_s10  }
  0x37   : > { %s302_s17 = scalar_lea.sflag [#allocation7], %s301_s16 }
  0x38   : > { %1417 = dma.done.wait (%p1547_p4), %s302_s17, 256  }
  0x39   : > { %1419 = vsyncadd (%p1547_p4), %s302_s17, 4294967040 }
  0x3a   : > { %1421 = dma.done.wait (%p1539_p1), [#allocation7], 512  }
  0x3b   : > { %1423 = vsyncadd (%p1539_p1), [#allocation7], 4294966784 }
  0x3c   : > { %1425 = dma.done.wait (%p1539_p1), [#allocation10], 4352  }
  0x3d   : > { %1427 = vsyncadd (%p1539_p1), [#allocation10], 4294962944  ;;  %p351_p3 = scmp.lt.s32.totalorder %s1446_s22, 1  ;;  %v354_v0 = vld [vmem:[%s295_s2] sm:$0xff]  ;;  %v355_v1 = vld [vmem:[%s295_s2 + $0x8] sm:$0xff]  ;;  %p1065_p4 = scmp.ne.s32.totalorder %s1442_s21, 0 }
  0x3e   : > { %v356_v2 = vld [vmem:[%s305_s24] sm:$0xff]  ;;  %v357_v3 = vld [vmem:[%s305_s24 + $0x8] sm:$0xff] }
  0x3f   : > { %s1859_s22 = smov (!%p351_p3, %s1446_s22), 1  ;;  %361 = sbr.rel (%p1065_p4) target bundleno = 74 (0x4a), region = 64 }
  0x40   : > { %s1656_s28 = scalar_lea.vmem %s1818_s5, %s1859_s22 }
  0x44   : > { %vm362_vm0 = vcmask 24576   ;;  %v1465_v4 = vmov 0.0  }
  0x45   : > { %363 = vst.msk [vmem:[%s1656_s28] sm:$0x1] %vm362_vm0, %v1465_v4 }
  0x46   : > { %364 = vst [vmem:[#allocation2] sm:$0xff] %v1465_v4 }
  0x47   : > { %365 = vst [vmem:[#allocation2 + $0x8] sm:$0xff] %v1465_v4 }
  0x48   : > { %366 = vst [vmem:[#allocation3 + $0x8] sm:$0xff] %v1465_v4 }
  0x49   : > { %367 = vst [vmem:[#allocation3] sm:$0xff] %v1465_v4 }
  0x4a PF: > { %vm368_vm1 = vcmp.gt.f32.partialorder %v356_v2, 0.0  ;;  %vm369_vm2 = vcmp.gt.f32.partialorder %v357_v3, 0.0  ;;  %v374_v5 = vsub.f32 %v356_v2, %v354_v0  ;;  %v1466_v6 = vmov 0.0   ;;  %p1068_p1 = scmp.ne.s32.totalorder %s1442_s21, 3 }
  0x4b   : > { %v1066_v7 = vsel %vm368_vm1, 1.0, %v1466_v6  ;;  %v1067_v8 = vsel %vm369_vm2, 1.0, %v1466_v6  ;;  %v375_v9 = vsub.f32 %v357_v3, %v355_v1  ;;  %v401_v38 = vlaneseq }
  0x4c   : > { %v376_v10 = vmul.f32 %v1066_v7, %v374_v5  ;;  %v390_v15 = vadd.f32 %v1067_v8, %v1066_v7  ;;  %v400_v40 = vld [vmem:[%s1656_s28] sm:$0x1]  ;;  %vm410_vm5 = vcmask 24576  }
  0x4d   : > { %v377_v11 = vmul.f32 %v1067_v8, %v375_v9  ;;  %v412_v30 = vld [vmem:[#allocation2] sm:$0xff]  ;;  %v1660_v39 = vand.u32 127, %v401_v38 }
  0x4e   : > { %v378_v12 = vand.u32 2147483647, %v376_v10  ;;  %v413_v31 = vld [vmem:[#allocation2 + $0x8] sm:$0xff]  ;;  %v414_v33 = vadd.f32 %v412_v30, %v354_v0 }
  0x4f   : > { %v379_v13 = vand.u32 2147483647, %v377_v11  ;;  %v418_v32 = vld [vmem:[#allocation3 + $0x8] sm:$0xff]  ;;  %v415_v34 = vadd.f32 %v413_v31, %v355_v1  ;;  %vm404_vm3 = vcmp.eq.s32.totalorder %v1660_v39, 1  ;;  %vm403_vm4 = vcmp.eq.s32.totalorder %v1660_v39, 0 }
  0x50   : > { %v419_v35 = vld [vmem:[#allocation3] sm:$0xff]  ;;  %v420_v36 = vadd.f32 %v418_v32, %v356_v2  ;;  %416 = vst [vmem:[#allocation2] sm:$0xff] %v414_v33 }
  0x51   : > { %v380_v14 = vadd.f32 %v379_v13, %v378_v12  ;;  %v421_v37 = vadd.f32 %v419_v35, %v357_v3  ;;  %417 = vst [vmem:[#allocation2 + $0x8] sm:$0xff] %v415_v34 }
  0x52   : > { %422 = vst [vmem:[#allocation3 + $0x8] sm:$0xff] %v420_v36 }
  0x53   : > { %381 = vadd.xlane.f32.xlu0 %v380_v14  ;;  %423 = vst [vmem:[#allocation3] sm:$0xff] %v421_v37 }
  0x5b   : > { %391 = vadd.xlane.f32.xlu0 %v390_v15 }
  0xc6   : > { %v382_v16 = vpop.xlane.xlu0 %381 }
  0xc7   : > { %v383_v17 = vrot.slane %v382_v16, 4 }
  0xc9   : > { %v384_v18 = vadd.f32 %v383_v17, %v382_v16 }
  0xcb   : > { %v385_v19 = vrot.slane %v384_v18, 2 }
  0xcd   : > { %v386_v20 = vadd.f32 %v385_v19, %v384_v18 }
  0xce   : > { %v392_v21 = vpop.xlane.xlu0 %391 }
  0xcf   : > { %v393_v22 = vrot.slane %v392_v21, 4  ;;  %v387_v23 = vrot.slane %v386_v20, 1 }
  0xd1   : > { %v394_v24 = vadd.f32 %v393_v22, %v392_v21  ;;  %v388_v25 = vadd.f32 %v387_v23, %v386_v20 }
  0xd3   : > { %v395_v26 = vrot.slane %v394_v24, 2  ;;  %1095 = vpush %v388_v25 }
  0xd5   : > { %v396_v27 = vadd.f32 %v395_v26, %v394_v24 }
  0xd7   : > { %v397_v28 = vrot.slane %v396_v27, 1 }
  0xd9   : > { %v398_v29 = vadd.f32 %v397_v28, %v396_v27 }
  0xdb   : > { %1097 = vpush %v398_v29 }
 0x104   : > { %s1096_s22 = spop %1095 }
 0x105   : > { %v407_v42 = vstv %s1096_s22 }
 0x10c   : > { %s1098_s27 = spop %1097 }
 0x10d   : > { %v405_v41 = vstv %s1098_s27 }
 0x10e   : > { %v406_v43 = vsel %vm404_vm3, %v405_v41, 0.0  ;;  %427 = sbr.rel (%p1068_p1) target bundleno = 946 (0x3b2), region = 68 }
 0x10f   : > { %v408_v44 = vsel %vm403_vm4, %v407_v42, %v406_v43 }
 0x110   : > { %v409_v45 = vadd.f32 %v408_v44, %v400_v40 }
 0x112   : > { %411 = vst.msk [vmem:[%s1656_s28] sm:$0x1] %vm410_vm5, %v409_v45 }
 0x113   : > { %v467_v46 = vld [vmem:[#allocation2 + $0x8] sm:$0xff]  ;;  %v466_v47 = vld [vmem:[#allocation2] sm:$0xff]  ;;  %v471_v50 = vld [vmem:[#allocation3] sm:$0xff]  ;;  %vm474_vm6 = vcmask 130048   ;;  %vm695_vm7 = vcmask 31744  }
 0x114   : > { %v469_v48 = vmul.f32 0.25, %v467_v46  ;;  %v468_v49 = vmul.f32 0.25, %v466_v47  ;;  %v470_v51 = vld [vmem:[#allocation3 + $0x8] sm:$0xff]  ;;  %v431_v52 = vld [vmem:[#allocation8 + $0x10] sm:$0xff]  ;;  %v1672_v53 = vld [vmem:[#allocation8] sm:$0xff]  ;;  %v473_v54 = vmul.f32 0.25, %v471_v50 }
 0x115   : > { %v472_v55 = vmul.f32 0.25, %v470_v51  ;;  %v432_v56 = vld [vmem:[#allocation8 + $0x18] sm:$0xff]  ;;  %v1677_v57 = vld [vmem:[#allocation8 + $0x8] sm:$0xff]  ;;  %v447_v59 = vld [vmem:[#allocation9 + $0x70] sm:$0xff] }
 0x116   : > { %495 = vmatpush.msra.mxu0 %v469_v48  ;;  %547 = vmatpush.msra.mxu2 %v469_v48  ;;  %v448_v58 = vld [vmem:[#allocation9 + $0x78] sm:$0xff]  ;;  %v446_v61 = vld [vmem:[#allocation9 + $0x68] sm:$0xff]  ;;  %v1685_v62 = vld [vmem:[#allocation9 + $0xf0] sm:$0xff] }
 0x117   : > { %504 = vmatpush.msra.mxu1 %v448_v58  ;;  %v1682_v60 = vld [vmem:[#allocation9 + $0xf8] sm:$0xff]  ;;  %v1687_v63 = vld [vmem:[#allocation9 + $0xe8] sm:$0xff]  ;;  %v445_v0 = vld [vmem:[#allocation9 + $0x60] sm:$0xff] }
 0x118   : > { %496 = vmatpush.msra.mxu0 %v468_v49  ;;  %548 = vmatpush.msra.mxu2 %v468_v49  ;;  %v1690_v1 = vld [vmem:[#allocation9 + $0xe0] sm:$0xff]  ;;  %v444_v2 = vld [vmem:[#allocation9 + $0x58] sm:$0xff]  ;;  %v443_v4 = vld [vmem:[#allocation9 + $0x50] sm:$0xff] }
 0x119   : > { %1069 = vmatmul.msk.f32.vlgmr.msra.gmra.mxu0 %vm474_vm6, %v431_v52  ;;  %1071 = vmatmul.msk.f32.vlgmr.msra.gmra.mxu2 %vm474_vm6, %v1672_v53  ;;  %v1693_v3 = vld [vmem:[#allocation9 + $0xd8] sm:$0xff]  ;;  %v1697_v5 = vld [vmem:[#allocation9 + $0xd0] sm:$0xff]  ;;  %v442_v6 = vld [vmem:[#allocation9 + $0x48] sm:$0xff] }
 0x11a   : > { %593 = vmatpush.msrb.mxu0 %v473_v54  ;;  %602 = vmatpush.msrb.mxu2 %v448_v58  ;;  %v1700_v7 = vld [vmem:[#allocation9 + $0xc8] sm:$0xff]  ;;  %v441_v8 = vld [vmem:[#allocation9 + $0x40] sm:$0xff]  ;;  %v440_v10 = vld [vmem:[#allocation9 + $0x38] sm:$0xff] }
 0x11b   : > { %556 = vmatpush.msra.mxu3 %v1682_v60  ;;  %505 = vmatpush.msra.mxu1 %v447_v59  ;;  %v1703_v9 = vld [vmem:[#allocation9 + $0xc0] sm:$0xff]  ;;  %v1706_v11 = vld [vmem:[#allocation9 + $0xb8] sm:$0xff]  ;;  %v439_v12 = vld [vmem:[#allocation9 + $0x30] sm:$0xff] }
 0x11c   : > { %594 = vmatpush.msrb.mxu0 %v472_v55  ;;  %603 = vmatpush.msrb.mxu2 %v447_v59  ;;  %v456_v13 = vld [vmem:[#allocation9 + $0xb0] sm:$0xff]  ;;  %v438_v14 = vld [vmem:[#allocation9 + $0x28] sm:$0xff]  ;;  %v437_v16 = vld [vmem:[#allocation9 + $0x20] sm:$0xff] }
 0x11d   : > { %557 = vmatpush.msra.mxu3 %v1685_v62  ;;  %506 = vmatpush.msra.mxu1 %v446_v61  ;;  %v455_v15 = vld [vmem:[#allocation9 + $0xa8] sm:$0xff]  ;;  %v454_v17 = vld [vmem:[#allocation9 + $0xa0] sm:$0xff]  ;;  %v436_v18 = vld [vmem:[#allocation9 + $0x18] sm:$0xff] }
 0x11e   : > { %639 = vmatpush.msra.mxu0 %v473_v54  ;;  %604 = vmatpush.msrb.mxu2 %v446_v61  ;;  %v435_v19 = vld [vmem:[#allocation9 + $0x10] sm:$0xff]  ;;  %v434_v20 = vld [vmem:[#allocation9 + $0x8] sm:$0xff]  ;;  %v433_v21 = vld [vmem:[#allocation9] sm:$0xff] }
 0x11f   : > { %558 = vmatpush.msra.mxu3 %v1687_v63  ;;  %507 = vmatpush.msra.mxu1 %v445_v0  ;;  %v453_v22 = vld [vmem:[#allocation9 + $0x98] sm:$0xff]  ;;  %v452_v23 = vld [vmem:[#allocation9 + $0x90] sm:$0xff]  ;;  %v451_v24 = vld [vmem:[#allocation9 + $0x88] sm:$0xff] }
 0x120   : > { %640 = vmatpush.msra.mxu0 %v472_v55  ;;  %605 = vmatpush.msrb.mxu2 %v445_v0  ;;  %v450_v25 = vld [vmem:[#allocation9 + $0x80] sm:$0xff] }
 0x121   : > { %1070 = vmatmul.msk.f32.gmra.mxu0 %vm474_vm6, %v432_v56  ;;  %1072 = vmatmul.msk.f32.gmra.mxu2 %vm474_vm6, %v1677_v57 }
 0x122   : > { %559 = vmatpush.msra.mxu3 %v1690_v1  ;;  %508 = vmatpush.msra.mxu1 %v444_v2 }
 0x123   : > { %606 = vmatpush.msrb.mxu2 %v444_v2  ;;  %v1733_v2 = vld [vmem:[#allocation11] sm:$0xff] }
 0x124   : > { %560 = vmatpush.msra.mxu3 %v1693_v3  ;;  %509 = vmatpush.msra.mxu1 %v443_v4 }
 0x125   : > { %607 = vmatpush.msrb.mxu2 %v443_v4 }
 0x126   : > { %561 = vmatpush.msra.mxu3 %v1697_v5  ;;  %510 = vmatpush.msra.mxu1 %v442_v6 }
 0x127   : > { %608 = vmatpush.msrb.mxu2 %v442_v6 }
 0x128   : > { %562 = vmatpush.msra.mxu3 %v1700_v7  ;;  %511 = vmatpush.msra.mxu1 %v441_v8 }
 0x129   : > { %1073 = vmatmul.msk.f32.vlgmr.msrb.gmra.mxu0 %vm474_vm6, %v431_v52  ;;  %609 = vmatpush.msrb.mxu2 %v441_v8 }
 0x12a   : > { %563 = vmatpush.msra.mxu3 %v1703_v9  ;;  %512 = vmatpush.msra.mxu1 %v440_v10 }
 0x12b   : > { %610 = vmatpush.msrb.mxu2 %v440_v10 }
 0x12c   : > { %564 = vmatpush.msra.mxu3 %v1706_v11  ;;  %513 = vmatpush.msra.mxu1 %v439_v12 }
 0x12d   : > { %611 = vmatpush.msrb.mxu2 %v439_v12 }
 0x12e   : > { %565 = vmatpush.msra.mxu3 %v456_v13  ;;  %514 = vmatpush.msra.mxu1 %v438_v14 }
 0x12f   : > { %612 = vmatpush.msrb.mxu2 %v438_v14 }
 0x130   : > { %566 = vmatpush.msra.mxu3 %v455_v15  ;;  %515 = vmatpush.msra.mxu1 %v437_v16 }
 0x131   : > { %1074 = vmatmul.msk.f32.gmra.mxu0 %vm474_vm6, %v432_v56  ;;  %613 = vmatpush.msrb.mxu2 %v437_v16 }
 0x132   : > { %567 = vmatpush.msra.mxu3 %v454_v17  ;;  %516 = vmatpush.msra.mxu1 %v436_v18 }
 0x133   : > { %614 = vmatpush.msrb.mxu2 %v436_v18 }
 0x134   : > { %517 = vmatpush.msra.mxu1 %v435_v19  ;;  %568 = vmatpush.msra.mxu3 %v453_v22 }
 0x135   : > { %615 = vmatpush.msrb.mxu2 %v435_v19 }
 0x136   : > { %518 = vmatpush.msra.mxu1 %v434_v20  ;;  %569 = vmatpush.msra.mxu3 %v452_v23 }
 0x137   : > { %616 = vmatpush.msrb.mxu2 %v434_v20 }
 0x138   : > { %519 = vmatpush.msra.mxu1 %v433_v21  ;;  %570 = vmatpush.msra.mxu3 %v451_v24 }
 0x139   : > { %1075 = vmatmul.msk.f32.vlgmr.msra.gmra.mxu0 %vm474_vm6, %v1672_v53  ;;  %617 = vmatpush.msrb.mxu2 %v433_v21 }
 0x13a   : > { %648 = vmatpush.msrb.mxu1 %v1682_v60  ;;  %571 = vmatpush.msra.mxu3 %v450_v25 }
 0x13c   : > { %649 = vmatpush.msrb.mxu1 %v1685_v62  ;;  %1079 = vmatpush.msrb.mxu3 %v1682_v60 }
 0x13e   : > { %650 = vmatpush.msrb.mxu1 %v1687_v63  ;;  %1080 = vmatpush.msrb.mxu3 %v1685_v62 }
 0x140   : > { %651 = vmatpush.msrb.mxu1 %v1690_v1  ;;  %1081 = vmatpush.msrb.mxu3 %v1687_v63 }
 0x141   : > { %1076 = vmatmul.msk.f32.gmra.mxu0 %vm474_vm6, %v1677_v57 }
 0x142   : > { %652 = vmatpush.msrb.mxu1 %v1693_v3  ;;  %1082 = vmatpush.msrb.mxu3 %v1690_v1 }
 0x144   : > { %653 = vmatpush.msrb.mxu1 %v1697_v5  ;;  %1083 = vmatpush.msrb.mxu3 %v1693_v3  ;;  %v1735_v3 = vld [vmem:[#allocation11 + $0x8] sm:$0xff] }
 0x146   : > { %654 = vmatpush.msrb.mxu1 %v1700_v7  ;;  %1084 = vmatpush.msrb.mxu3 %v1697_v5 }
 0x148   : > { %655 = vmatpush.msrb.mxu1 %v1703_v9  ;;  %1085 = vmatpush.msrb.mxu3 %v1700_v7 }
 0x14a   : > { %656 = vmatpush.msrb.mxu1 %v1706_v11  ;;  %1086 = vmatpush.msrb.mxu3 %v1703_v9 }
 0x14c   : > { %657 = vmatpush.msrb.mxu1 %v456_v13  ;;  %1087 = vmatpush.msrb.mxu3 %v1706_v11 }
 0x14e   : > { %658 = vmatpush.msrb.mxu1 %v455_v15  ;;  %1088 = vmatpush.msrb.mxu3 %v456_v13 }
 0x150   : > { %659 = vmatpush.msrb.mxu1 %v454_v17  ;;  %1089 = vmatpush.msrb.mxu3 %v455_v15 }
 0x152   : > { %660 = vmatpush.msrb.mxu1 %v453_v22  ;;  %1090 = vmatpush.msrb.mxu3 %v454_v17 }
 0x154   : > { %661 = vmatpush.msrb.mxu1 %v452_v23  ;;  %1091 = vmatpush.msrb.mxu3 %v453_v22 }
 0x156   : > { %662 = vmatpush.msrb.mxu1 %v451_v24  ;;  %1092 = vmatpush.msrb.mxu3 %v452_v23 }
 0x158   : > { %663 = vmatpush.msrb.mxu1 %v450_v25  ;;  %1093 = vmatpush.msrb.mxu3 %v451_v24 }
 0x15a   : > { %1094 = vmatpush.msrb.mxu3 %v450_v25 }
 0x196   : > { %v498_v26 = vpop.f32.mrf.mxu0 }
 0x197   : > { %520 = vmatmul.f32.vlgmr.msra.gmra.mxu1 %v498_v26 }
 0x19c   : > { %v550_v27 = vpop.f32.mrf.mxu2 }
 0x19d   : > { %572 = vmatmul.f32.vlgmr.msra.gmra.mxu3 %v550_v27 }
 0x19e   : > { %v501_v28 = vpop.f32.mrf.mxu0 }
 0x19f   : > { %523 = vmatmul.f32.gmra.mxu1 %v501_v28 }
 0x1a4   : > { %v553_v29 = vpop.f32.mrf.mxu2 }
 0x1a5   : > { %575 = vmatmul.f32.gmra.mxu3 %v553_v29 }
 0x1a6   : > { %v596_v30 = vpop.f32.mrf.mxu0 }
 0x1a7   : > { %618 = vmatmul.f32.vlgmr.msrb.gmra.mxu2 %v596_v30 }
 0x1ae   : > { %v599_v31 = vpop.f32.mrf.mxu0 }
 0x1af   : > { %621 = vmatmul.f32.gmra.mxu2 %v599_v31 }
 0x1b6   : > { %v642_v32 = vpop.f32.mrf.mxu0 }
 0x1b7   : > { %664 = vmatmul.f32.vlgmr.msrb.gmra.mxu1 %v642_v32 }
 0x1be   : > { %v645_v33 = vpop.f32.mrf.mxu0 }
 0x1bf   : > { %667 = vmatmul.f32.vlgmr.msrb.gmra.mxu3 %v645_v33 }
 0x214   : > { %v521_v34 = vpop.f32.mrf.mxu1 }
 0x215   : > { %v705_v35 = vmul.f32 %v521_v34, %v521_v34 }
 0x217   : > { %707 = vadd.xlane.f32.xlu0 %v705_v35 }
 0x21c   : > { %v524_v36 = vpop.f32.mrf.mxu1 }
 0x21d   : > { %v706_v37 = vmul.f32 %v524_v36, %v524_v36 }
 0x21f   : > { %709 = vadd.xlane.f32.xlu0 %v706_v37 }
 0x220   : > { %v573_v38 = vpop.f32.mrf.mxu3 }
 0x221   : > { %v821_v40 = vmul.f32 %v573_v38, %v573_v38 }
 0x223   : > { %823 = vadd.xlane.f32.xlu2 %v821_v40 }
 0x228   : > { %v576_v41 = vpop.f32.mrf.mxu3 }
 0x229   : > { %v822_v42 = vmul.f32 %v576_v41, %v576_v41 }
 0x22a   : > { %v619_v43 = vpop.f32.mrf.mxu2 }
 0x22b   : > { %825 = vadd.xlane.f32.xlu2 %v822_v42  ;;  %v722_v44 = vmul.f32 %v619_v43, %v619_v43  ;;  %v687_v45 = vmul.f32 %v619_v43, %v521_v34  ;;  %v673_v52 = vsub.f32 %v521_v34, %v619_v43 }
 0x22d   : > { %724 = vadd.xlane.f32.xlu1 %v722_v44  ;;  %v675_v58 = vand.u32 2147483647, %v673_v52 }
 0x232   : > { %v622_v46 = vpop.f32.mrf.mxu2 }
 0x233   : > { %689 = vadd.xlane.f32.xlu2 %v687_v45  ;;  %v723_v47 = vmul.f32 %v622_v46, %v622_v46  ;;  %v674_v50 = vsub.f32 %v524_v36, %v622_v46  ;;  %v688_v51 = vmul.f32 %v622_v46, %v524_v36 }
 0x234   : > { %v665_v48 = vpop.f32.mrf.mxu1 }
 0x235   : > { %726 = vadd.xlane.f32.xlu1 %v723_v47  ;;  %v838_v49 = vmul.f32 %v665_v48, %v665_v48  ;;  %v676_v53 = vand.u32 2147483647, %v674_v50  ;;  %v790_v59 = vsub.f32 %v573_v38, %v665_v48  ;;  %v804_v63 = vmul.f32 %v665_v48, %v573_v38 }
 0x237   : > { %840 = vadd.xlane.f32.xlu0 %v838_v49  ;;  %v677_v60 = vadd.f32 %v676_v53, %v675_v58  ;;  %v792_v62 = vand.u32 2147483647, %v790_v59 }
 0x23f   : > { %691 = vadd.xlane.f32.xlu0 %v688_v51 }
 0x242   : > { %v668_v54 = vpop.f32.mrf.mxu3 }
 0x243   : > { %v791_v55 = vsub.f32 %v576_v41, %v668_v54  ;;  %v839_v56 = vmul.f32 %v668_v54, %v668_v54  ;;  %v805_v57 = vmul.f32 %v668_v54, %v576_v41 }
 0x245   : > { %842 = vadd.xlane.f32.xlu1 %v839_v56  ;;  %808 = vadd.xlane.f32.xlu2 %v805_v57  ;;  %v793_v61 = vand.u32 2147483647, %v791_v55 }
 0x247   : > { %678 = vadd.xlane.f32.xlu0 %v677_v60  ;;  %v794_v0 = vadd.f32 %v793_v61, %v792_v62 }
 0x24d   : > { %806 = vadd.xlane.f32.xlu1 %v804_v63  ;;  %795 = vadd.xlane.f32.xlu2 %v794_v0 }
 0x28a   : > { %v708_v1 = vpop.xlane.xlu0 %707 }
 0x28b   : > { %v711_v4 = vmul.f32 %v708_v1, %v1733_v2 }
 0x28d   : > { %v713_v7 = vsel %vm695_vm7, %v711_v4, 0.0 }
 0x292   : > { %v710_v5 = vpop.xlane.xlu0 %709 }
 0x293   : > { %v712_v6 = vmul.f32 %v710_v5, %v1735_v3 }
 0x295   : > { %v714_v8 = vsel %vm695_vm7, %v712_v6, 0.0 }
 0x296   : > { %v715_v9 = vadd.f32 %v714_v8, %v713_v7  ;;  %v824_v10 = vpop.xlane.xlu2 %823 }
 0x297   : > { %v827_v13 = vmul.f32 %v824_v10, %v1733_v2 }
 0x298   : > { %v716_v11 = vrot.slane %v715_v9, 4 }
 0x299   : > { %v829_v17 = vsel %vm695_vm7, %v827_v13, 0.0 }
 0x29a   : > { %v717_v12 = vadd.f32 %v716_v11, %v715_v9 }
 0x29c   : > { %v718_v14 = vrot.slane %v717_v12, 2 }
 0x29e   : > { %v719_v15 = vadd.f32 %v718_v14, %v717_v12  ;;  %v826_v16 = vpop.xlane.xlu2 %825 }
 0x29f   : > { %v828_v18 = vmul.f32 %v826_v16, %v1735_v3 }
 0x2a0   : > { %v725_v19 = vpop.xlane.xlu1 %724  ;;  %v720_v21 = vrot.slane %v719_v15, 1 }
 0x2a1   : > { %v830_v20 = vsel %vm695_vm7, %v828_v18, 0.0  ;;  %v728_v26 = vmul.f32 %v725_v19, %v1733_v2 }
 0x2a2   : > { %v831_v22 = vadd.f32 %v830_v20, %v829_v17  ;;  %v1745_v24 = vadd.f32 %v720_v21, %v719_v15 }
 0x2a3   : > { %v730_v31 = vsel %vm695_vm7, %v728_v26, 0.0 }
 0x2a4   : > { %v832_v23 = vrot.slane %v831_v22, 4  ;;  %1218 = vrsqrt.f32 %v1745_v24  ;;  %vm746_vm8 = vcmp.eq.f32.partialorder %v1745_v24, inf  ;;  %v749_v26 = vand.u32 2147483648, %v1745_v24 }
 0x2a5   : > { %vm748_vm10 = vcmp.eq.f32.partialorder %v1745_v24, 0.0 }
 0x2a6   : > { %v833_v25 = vadd.f32 %v832_v23, %v831_v22  ;;  %v690_v62 = vpop.xlane.xlu2 %689 }
 0x2a7   : > { %v693_v7 = vmul.f32 %v690_v62, %v1733_v2 }
 0x2a8   : > { %v727_v27 = vpop.xlane.xlu1 %726  ;;  %v834_v30 = vrot.slane %v833_v25, 2 }
 0x2a9   : > { %v729_v28 = vmul.f32 %v727_v27, %v1735_v3  ;;  %v696_v17 = vsel %vm695_vm7, %v693_v7, 0.0 }
 0x2aa   : > { %v841_v29 = vpop.xlane.xlu0 %840  ;;  %v835_v35 = vadd.f32 %v834_v30, %v833_v25  ;;  %v1219_v36 = vpop.eup %1218 }
 0x2ab   : > { %v731_v32 = vsel %vm695_vm7, %v729_v28, 0.0  ;;  %v740_v42 = vmul.f32 %v1219_v36, %v1745_v24  ;;  %v844_v45 = vmul.f32 %v841_v29, %v1733_v2 }
 0x2ac   : > { %v732_v33 = vadd.f32 %v731_v32, %v730_v31  ;;  %v836_v41 = vrot.slane %v835_v35, 1 }
 0x2ad   : > { %v741_v47 = vmul.f32 %v1219_v36, %v740_v42  ;;  %v846_v51 = vsel %vm695_vm7, %v844_v45, 0.0 }
 0x2ae   : > { %v733_v34 = vrot.slane %v732_v33, 4  ;;  %v1754_v46 = vadd.f32 %v836_v41, %v835_v35 }
 0x2af   : > { %v742_v55 = vmul.f32 0.5, %v741_v47 }
 0x2b0   : > { %v734_v37 = vadd.f32 %v733_v34, %v732_v33  ;;  %vm862_vm12 = vcmp.eq.f32.partialorder %v1754_v46, inf  ;;  %vm864_vm13 = vcmp.eq.f32.partialorder %v1754_v46, 0.0 }
 0x2b1   : > { %v743_v60 = vsub.f32 1.5, %v742_v55 }
 0x2b2   : > { %v735_v38 = vrot.slane %v734_v37, 2  ;;  %v692_v40 = vpop.xlane.xlu0 %691 }
 0x2b3   : > { %v694_v1 = vmul.f32 %v692_v40, %v1735_v3  ;;  %v744_v9 = vmul.f32 %v1219_v36, %v743_v60 }
 0x2b4   : > { %v736_v43 = vadd.f32 %v735_v38, %v734_v37 }
 0x2b5   : > { %v697_v13 = vsel %vm695_vm7, %v694_v1, 0.0  ;;  %v745_v18 = vmul.f32 %v744_v9, %v1745_v24 }
 0x2b6   : > { %v737_v44 = vrot.slane %v736_v43, 1  ;;  %v698_v20 = vadd.f32 %v697_v13, %v696_v17 }
 0x2b7   : > { %v747_v25 = vsel %vm746_vm8, %v1745_v24, %v745_v18 }
 0x2b8   : > { %v738_v48 = vadd.f32 %v737_v44, %v736_v43  ;;  %v843_v49 = vpop.xlane.xlu1 %842  ;;  %v699_v28 = vrot.slane %v698_v20, 4  ;;  %v750_v32 = vsel %vm748_vm10, %v749_v26, %v747_v25  ;;  %v809_v42 = vpop.xlane.xlu2 %808 }
 0x2b9   : > { %v845_v50 = vmul.f32 %v843_v49, %v1735_v3  ;;  %v811_v24 = vmul.f32 %v809_v42, %v1735_v3 }
 0x2ba   : > { %1220 = vrsqrt.f32 %v738_v48  ;;  %v679_v52 = vpop.xlane.xlu0 %678  ;;  %vm758_vm9 = vcmp.eq.f32.partialorder %v738_v48, inf  ;;  %v761_v29 = vand.u32 2147483648, %v738_v48  ;;  %vm760_vm11 = vcmp.eq.f32.partialorder %v738_v48, 0.0 }
 0x2bb   : > { %1222 = vrsqrt.f32 %v1754_v46  ;;  %v847_v53 = vsel %vm695_vm7, %v845_v50, 0.0  ;;  %v680_v54 = vrot.slane %v679_v52, 4  ;;  %v700_v36 = vadd.f32 %v699_v28, %v698_v20 }
 0x2bc   : > { %v848_v56 = vadd.f32 %v847_v53, %v846_v51 }
 0x2bd   : > { %v681_v57 = vadd.f32 %v680_v54, %v679_v52  ;;  %v701_v44 = vrot.slane %v700_v36, 2  ;;  %v813_v54 = vsel %vm695_vm7, %v811_v24, 0.0 }
 0x2be   : > { %v849_v58 = vrot.slane %v848_v56, 4 }
 0x2bf   : > { %v682_v59 = vrot.slane %v681_v57, 2  ;;  %v702_v50 = vadd.f32 %v701_v44, %v700_v36 }
 0x2c0   : > { %v1221_v61 = vpop.eup %1220  ;;  %v850_v63 = vadd.f32 %v849_v58, %v848_v56  ;;  %v807_v38 = vpop.xlane.xlu1 %806 }
 0x2c1   : > { %v1223_v0 = vpop.eup %1222  ;;  %v683_v4 = vadd.f32 %v682_v59, %v681_v57  ;;  %v752_v5 = vmul.f32 %v1221_v61, %v738_v48  ;;  %v810_v43 = vmul.f32 %v807_v38, %v1733_v2  ;;  %v865_v2 = vand.u32 2147483648, %v1754_v46 }
 0x2c2   : > { %v851_v6 = vrot.slane %v850_v63, 2  ;;  %v856_v12 = vmul.f32 %v1223_v0, %v1754_v46  ;;  %v703_v3 = vrot.slane %v702_v50, 1 }
 0x2c3   : > { %v684_v8 = vrot.slane %v683_v4, 1  ;;  %v753_v10 = vmul.f32 %v1221_v61, %v752_v5 }
 0x2c4   : > { %v852_v11 = vadd.f32 %v851_v6, %v850_v63  ;;  %v857_v22 = vmul.f32 %v1223_v0, %v856_v12 }
 0x2c5   : > { %v685_v14 = vadd.f32 %v684_v8, %v683_v4  ;;  %v754_v15 = vmul.f32 0.5, %v753_v10  ;;  %v704_v10 = vadd.f32 %v703_v3, %v702_v50 }
 0x2c6   : > { %v853_v16 = vrot.slane %v852_v11, 1  ;;  %v858_v30 = vmul.f32 0.5, %v857_v22 }
 0x2c7   : > { %1099 = vpush %v685_v14  ;;  %v755_v19 = vsub.f32 1.5, %v754_v15 }
 0x2c8   : > { %v854_v21 = vadd.f32 %v853_v16, %v852_v11  ;;  %v859_v37 = vsub.f32 1.5, %v858_v30 }
 0x2c9   : > { %v756_v23 = vmul.f32 %v1221_v61, %v755_v19 }
 0x2ca   : > { %1224 = vrsqrt.f32 %v854_v21  ;;  %v860_v45 = vmul.f32 %v1223_v0, %v859_v37  ;;  %vm874_vm14 = vcmp.eq.f32.partialorder %v854_v21, inf  ;;  %vm876_vm15 = vcmp.eq.f32.partialorder %v854_v21, 0.0 }
 0x2cb   : > { %v757_v27 = vmul.f32 %v756_v23, %v738_v48  ;;  %v877_v62 = vand.u32 2147483648, %v854_v21 }
 0x2cc   : > { %v861_v51 = vmul.f32 %v860_v45, %v1754_v46 }
 0x2cd   : > { %v759_v31 = vsel %vm758_vm9, %v738_v48, %v757_v27  ;;  %v812_v48 = vsel %vm695_vm7, %v810_v43, 0.0 }
 0x2ce   : > { %v762_v33 = vsel %vm760_vm11, %v761_v29, %v759_v31  ;;  %v814_v57 = vadd.f32 %v813_v54, %v812_v48  ;;  %v863_v59 = vsel %vm862_vm12, %v1754_v46, %v861_v51  ;;  %vm909_vm11 = vcmp.eq.s32.totalorder %v1660_v39, 2 }
 0x2cf   : > { %v763_v34 = vmul.f32 %v762_v33, %v750_v32  ;;  %v866_v5 = vsel %vm864_vm13, %v865_v2, %v863_v59  ;;  %v796_v33 = vpop.xlane.xlu2 %795 }
 0x2d0   : > { %v1225_v35 = vpop.eup %1224  ;;  %v815_v4 = vrot.slane %v814_v57, 4 }
 0x2d1   : > { %v764_v40 = vadd.f32 1e-08, %v763_v34  ;;  %v868_v41 = vmul.f32 %v1225_v35, %v854_v21  ;;  %v797_v34 = vrot.slane %v796_v33, 4 }
 0x2d2   : > { %v816_v12 = vadd.f32 %v815_v4, %v814_v57  ;;  %v908_v57 = vld [vmem:[%s1656_s28] sm:$0x1] }
 0x2d3   : > { %1226 = vrcp.f32 %v764_v40  ;;  %v869_v47 = vmul.f32 %v1225_v35, %v868_v41  ;;  %v776_v61 = vand.u32 2147483648, %v764_v40  ;;  %v774_v0 = vand.u32 2147483647, %v764_v40 }
 0x2d4   : > { %vm770_vm1 = vweird.f32 %v764_v40  ;;  %v817_v16 = vrot.slane %v816_v12, 2 }
 0x2d5   : > { %v870_v49 = vmul.f32 0.5, %v869_v47  ;;  %v777_v9 = vor.u32 1.1754944e-38, %v776_v61  ;;  %vm775_vm6 = vcmp.eq.f32.partialorder %v774_v0, 8.507059e+37 }
 0x2d6   : > { %v818_v18 = vadd.f32 %v817_v16, %v816_v12 }
 0x2d7   : > { %v871_v52 = vsub.f32 1.5, %v870_v49 }
 0x2d8   : > { %v819_v22 = vrot.slane %v818_v18, 1 }
 0x2d9   : > { %v1227_v53 = vpop.eup %1226  ;;  %v872_v56 = vmul.f32 %v1225_v35, %v871_v52  ;;  %v798_v35 = vadd.f32 %v797_v34, %v796_v33 }
 0x2da   : > { %v766_v55 = vmul.f32 %v1227_v53, %v764_v40  ;;  %vm771_vm0 = vweird.f32 %v1227_v53  ;;  %v820_v28 = vadd.f32 %v819_v22, %v818_v18 }
 0x2db   : > { %v873_v60 = vmul.f32 %v872_v56, %v854_v21  ;;  %vm772_vm2 = vmor %vm770_vm1, %vm771_vm0  ;;  %v799_v36 = vrot.slane %v798_v35, 2 }
 0x2dc   : > { %v767_v58 = vsub.f32 1.0, %v766_v55 }
 0x2dd   : > { %v875_v1 = vsel %vm874_vm14, %v854_v21, %v873_v60  ;;  %v800_v41 = vadd.f32 %v799_v36, %v798_v35 }
 0x2de   : > { %v768_v63 = vmul.f32 %v1227_v53, %v767_v58  ;;  %v878_v6 = vsel %vm876_vm15, %v877_v62, %v875_v1 }
 0x2df   : > { %v879_v8 = vmul.f32 %v878_v6, %v866_v5  ;;  %v801_v44 = vrot.slane %v800_v41, 1 }
 0x2e0   : > { %v769_v7 = vadd.f32 %v1227_v53, %v768_v63 }
 0x2e1   : > { %v880_v46 = vadd.f32 1e-08, %v879_v8  ;;  %v802_v24 = vadd.f32 %v801_v44, %v800_v41 }
 0x2e2   : > { %v773_v11 = vsel %vm772_vm2, %v1227_v53, %v769_v7 }
 0x2e3   : > { %v778_v13 = vsel %vm775_vm6, %v777_v9, %v773_v11  ;;  %1228 = vrcp.f32 %v880_v46  ;;  %v892_v21 = vand.u32 2147483648, %v880_v46  ;;  %v890_v25 = vand.u32 2147483647, %v880_v46 }
 0x2e4   : > { %v779_v14 = vmul.f32 %v778_v13, %v704_v10  ;;  %vm886_vm8 = vweird.f32 %v880_v46 }
 0x2e5   : > { %v893_v27 = vor.u32 1.1754944e-38, %v892_v21  ;;  %vm891_vm10 = vcmp.eq.f32.partialorder %v890_v25, 8.507059e+37 }
 0x2e6   : > { %v780_v15 = vsel %vm410_vm5, %v779_v14, 0.0 }
 0x2e7   : > { %781 = vadd.xlane.f32.xlu1 %v780_v15 }
 0x2e9   : > { %v1229_v17 = vpop.eup %1228 }
 0x2ea   : > { %v882_v19 = vmul.f32 %v1229_v17, %v880_v46  ;;  %vm887_vm7 = vweird.f32 %v1229_v17 }
 0x2eb   : > { %vm888_vm9 = vmor %vm886_vm8, %vm887_vm7 }
 0x2ec   : > { %v883_v20 = vsub.f32 1.0, %v882_v19 }
 0x2ee   : > { %v884_v23 = vmul.f32 %v1229_v17, %v883_v20 }
 0x2f0   : > { %v885_v26 = vadd.f32 %v1229_v17, %v884_v23 }
 0x2f2   : > { %v889_v29 = vsel %vm888_vm9, %v1229_v17, %v885_v26 }
 0x2f3   : > { %v894_v30 = vsel %vm891_vm10, %v893_v27, %v889_v29 }
 0x2f4   : > { %v895_v31 = vmul.f32 %v894_v30, %v820_v28 }
 0x2f6   : > { %v896_v32 = vsel %vm410_vm5, %v895_v31, 0.0 }
 0x2f7   : > { %897 = vadd.xlane.f32.xlu0 %v896_v32 }
 0x2f8   : > { %s1100_s21 = spop %1099 }
 0x35a   : > { %v782_v37 = vpop.xlane.xlu1 %781 }
 0x35b   : > { %v783_v38 = vrot.slane %v782_v37, 4 }
 0x35d   : > { %v784_v40 = vadd.f32 %v783_v38, %v782_v37 }
 0x35f   : > { %v785_v42 = vrot.slane %v784_v40, 2 }
 0x361   : > { %v786_v43 = vadd.f32 %v785_v42, %v784_v40 }
 0x363   : > { %v787_v45 = vrot.slane %v786_v43, 1 }
 0x365   : > { %v788_v47 = vadd.f32 %v787_v45, %v786_v43 }
 0x367   : > { %1101 = vpush %v788_v47 }
 0x368   : > { %1103 = vpush %v802_v24 }
 0x36a   : > { %v898_v49 = vpop.xlane.xlu0 %897 }
 0x36b   : > { %v899_v48 = vrot.slane %v898_v49, 4 }
 0x36d   : > { %v900_v50 = vadd.f32 %v899_v48, %v898_v49 }
 0x36f   : > { %v901_v51 = vrot.slane %v900_v50, 2 }
 0x371   : > { %v902_v52 = vadd.f32 %v901_v51, %v900_v50 }
 0x373   : > { %v903_v53 = vrot.slane %v902_v52, 1 }
 0x375   : > { %v904_v54 = vadd.f32 %v903_v53, %v902_v52 }
 0x377   : > { %1105 = vpush %v904_v54 }
 0x398   : > { %s1102_s18 = spop %1101 }
 0x399   : > { %s1104_s29 = spop %1103 }
 0x39a   : > { %s906_s26 = sadd.f32 %s1104_s29, %s1100_s21 }
 0x39c   : > { %v910_v55 = vstv %s906_s26 }
 0x3a8   : > { %s1106_s30 = spop %1105 }
 0x3a9   : > { %s907_s12 = sadd.f32 %s1106_s30, %s1102_s18 }
 0x3ab   : > { %v911_v56 = vstv %s907_s12 }
 0x3ac   : > { %v912_v2 = vsel %vm909_vm11, %v910_v55, %v911_v56 }
 0x3ad   : > { %v913_v3 = vsel %vm404_vm3, 0.0, %v912_v2 }
 0x3ae   : > { %v914_v58 = vsel %vm403_vm4, 0.0, %v913_v3 }
 0x3af   : > { %v915_v59 = vadd.f32 %v914_v58, %v908_v57 }
 0x3b1   : > { %916 = vst.msk [vmem:[%s1656_s28] sm:$0x1] %vm410_vm5, %v915_v59 }
 0x3b2 PF: > { %s22_s25 = sadd.s32 1, %s1458_s25   ;;  %s1844_s22 = sld [smem:[#allocation16_spill]] }
 0x3b3   : > { %p19_p5 = scmp.ge.s32.totalorder %s22_s25, 10   ;;  %s1845_s8 = sld [smem:[#allocation17_spill]] }
 0x3b4   : > { %s1846_s24 = sld [smem:[#allocation18_spill]]  ;;  %s1847_s18 = smov %s1434_s19 }
 0x3b5   : > { %s1848_s19 = smov %s1438_s20  ;;  %s1849_s20 = smov %s1611_s15 }
 0x3b6   : > { %s1850_s21 = smov %s1450_s23  ;;  %21 = sbr.rel (!%p19_p5) target bundleno = 12 (0xc), region = 115 }
 0x3b9   : > { %s1851_s23 = smov %s1845_s8 }
 0x3bb   :  { %934 = vsyncpa [#allocation5], 1 }
 0x3bc   :  { %936 = vsyncpa [#allocation5 + $0x1], 1 }
 0x3bd   :  { %937 = vsyncpa [#allocation7], 1 }
 0x3be   :  { %939 = vsyncpa [#allocation7 + $0x1], 1 }
 0x3bf   :  { %940 = vsyncpa [#allocation10], 1 }

</bundles_post_ra>
